<compile_context>
chip_gen: v6e
topology: v6e:2x2x1
jax: 0.10.0
libtpu: 0.0.40
codegen_flags: <defaults>
</compile_context>

<pallas_src>
import functools

import numpy as np
import jax
import jax.numpy as jnp
from jax.experimental import pallas as pl
from jax.experimental.pallas import tpu as pltpu

BN_EPS = 1e-5
_VMEM_LIMIT = 32 * 1024 * 1024   # explicit scoped-VMEM budget (safe on v5e/v6e/v7x)
_LANE = 128                      # token tiles live on the 128-lane axis
_STATS_TOKEN_TARGET = 8192       # stats passes: tiny outputs -> amortize step overhead
_APPLY_TOKEN_TARGET = 2048       # apply pass: bounded by 2*F*tile*4 output double-buffer


def _plan_tiles(total, target, align, min_tiles=1):
    """Token-tile planner. Returns (tile, num_tiles, padded_total).

    tile is a multiple of `align` (or == total when total <= align), tile <= target
    (rounded), num_tiles * tile == padded_total >= total.  Prefers an exact divisor
    (no padding / masking); otherwise pads so we never collapse to a single ragged
    full-extent block.  The last tile always covers >= 1 valid token.
    """
    if total <= align:
        return total, 1, total
    cap = max(align, -(-total // min_tiles))           # >= min_tiles grid steps
    cap = -(-cap // align) * align
    tile = min(max(target, align) // align * align, cap, -(-total // align) * align)
    t = tile
    while t >= align:                                  # prefer exact divisor
        if total % t == 0 and (total // t >= min_tiles or t == align):
            return t, total // t, total
        t -= align
    padded = -(-total // tile) * tile
    return tile, padded // tile, padded


def _conv1_cm(x, w1):
    """Conv1d(2->C1, k=1) channel-major: (C1,2) weights x (2,tile) tokens -> (C1,tile).
    Cin=2 => two broadcast FMAs on the VPU (no MXU pass); tokens stay lane-dense."""
    return w1[:, 0:1] * x[0:1, :] + w1[:, 1:2] * x[1:2, :]


def _moments(h, count):
    """Per-tile sum and sum of squared deviations from the tile mean (token axis)."""
    s = jnp.sum(h, axis=-1, keepdims=True)
    mu = s * (1.0 / count)
    d = h - mu
    return s, jnp.sum(d * d, axis=-1, keepdims=True)


def _masked_moments(h, mask, count):
    hm = jnp.where(mask, h, 0.0)
    s = jnp.sum(hm, axis=-1, keepdims=True)
    mu = s / count
    d = jnp.where(mask, h - mu, 0.0)
    return s, jnp.sum(d * d, axis=-1, keepdims=True)


def _token_mask(tile, n_valid_total, grid_axis):
    """Lane mask + valid-token count for the current token tile (padding path)."""
    start = pl.program_id(grid_axis) * tile
    valid = n_valid_total - start                      # >= 1 by planner construction
    lane = jax.lax.broadcasted_iota(jnp.int32, (1, tile), 1)
    mask = lane < valid
    count = jnp.minimum(valid, tile).astype(jnp.float32)
    return mask, count


def _make_stats1_kernel(tile, n_valid, masked):
    def kernel(x_ref, w1_ref, sum_ref, m2_ref):
        h1 = _conv1_cm(x_ref[...], w1_ref[...])                  # (C1, tile) f32
        if masked:
            mask, cnt = _token_mask(tile, n_valid, 1)
            s, m2 = _masked_moments(h1, mask, cnt)
        else:
            s, m2 = _moments(h1, tile)
        sum_ref[...] = s
        m2_ref[...] = m2
    return kernel


def _make_stats2_kernel(tile, n_valid, masked):
    def kernel(x_ref, w1_ref, sc1_ref, sh1_ref, w2_ref, sum_ref, m2_ref):
        h1 = _conv1_cm(x_ref[...], w1_ref[...])
        h1 = jnp.maximum(h1 * sc1_ref[...] + sh1_ref[...], 0.0)  # folded BN1 + ReLU
        h2 = jnp.dot(w2_ref[...], h1.astype(jnp.bfloat16),       # (C2,C1)@(C1,tile), MXU
                     preferred_element_type=jnp.float32)
        if masked:
            mask, cnt = _token_mask(tile, n_valid, 1)
            s, m2 = _masked_moments(h2, mask, cnt)
        else:
            s, m2 = _moments(h2, tile)
        sum_ref[...] = s
        m2_ref[...] = m2
    return kernel


def _apply_kernel(x_ref, w1_ref, sc1_ref, sh1_ref, w2_ref, sc2_ref, sh2_ref,
                  w3_ref, b3_ref, o_ref):
    h1 = _conv1_cm(x_ref[...], w1_ref[...])
    h1 = jnp.maximum(h1 * sc1_ref[...] + sh1_ref[...], 0.0)
    h2 = jnp.dot(w2_ref[...], h1.astype(jnp.bfloat16),
                 preferred_element_type=jnp.float32)
    h2 = jnp.maximum(h2 * sc2_ref[...] + sh2_ref[...], 0.0)
    h3 = jnp.dot(w3_ref[...], h2.astype(jnp.bfloat16),           # (F,C2)@(C2,tile), plain A@B
                 preferred_element_type=jnp.float32)
    o_ref[...] = h3 + b3_ref[...]                                 # lane-dense (F, tile)


def _fold_bn(tile_sum, tile_m2, counts, total_count, gamma, beta):
    """Chan parallel-variance combine of per-tile moments -> folded BN scale/shift.
    Honors per-tile valid-token counts (ragged last tiles under padding).
    A conv bias feeding training-mode BN cancels exactly, so it never appears."""
    B_, nt_, C = tile_sum.shape[:3]
    s = tile_sum.reshape(B_ * nt_, C).astype(jnp.float32)
    m2 = tile_m2.reshape(B_ * nt_, C).astype(jnp.float32)
    mean = jnp.sum(s, axis=0) / total_count
    tile_mean = s / counts
    m2_tot = jnp.sum(m2, axis=0) + jnp.sum(counts * (tile_mean - mean[None, :]) ** 2,
                                           axis=0)
    var = m2_tot / total_count                         # biased (PyTorch BN training)
    scale = gamma * jax.lax.rsqrt(var + BN_EPS)
    shift = beta - mean * scale
    return scale.reshape(C, 1), shift.reshape(C, 1)


def init_keypoint_encoder_params(key, feature_dim, layers, in_dim=2):
    """Deterministic synthetic parameters matching nn.Conv1d / nn.BatchNorm1d shapes."""
    channels = [in_dim] + list(layers) + [feature_dim]
    params = []
    n_conv = len(channels) - 1
    keys = jax.random.split(key, 2 * n_conv)
    for i in range(n_conv):
        cin, cout = channels[i], channels[i + 1]
        w = jax.random.normal(keys[2 * i], (cout, cin), jnp.float32) * (1.0 / jnp.sqrt(cin))
        if i == n_conv - 1:
            b = jnp.zeros((cout,), jnp.float32)  # nn.init.constant_(encoder[-1].bias, 0.)
        else:
            b = jax.random.normal(keys[2 * i + 1], (cout,), jnp.float32) * 0.1
        layer = {"w": w, "b": b}
        if i < n_conv - 1:
            layer["gamma"] = jnp.ones((cout,), jnp.float32)
            layer["beta"] = jnp.zeros((cout,), jnp.float32)
        params.append(layer)
    return params


def _keypoint_encoder_forward(kpts, scores, params):
    """kpts: (B, N, 2) float32; scores unused (score=False). Returns (B, feature_dim, N)."""
    del scores  # score=False -> scores are not concatenated
    B, N, cin = kpts.shape
    assert cin == 2, "score=False encoder takes (x, y) keypoints"
    M = B * N
    l1, l2, l3 = params
    C1 = l1["w"].shape[0]
    C2 = l2["w"].shape[0]
    F = l3["w"].shape[0]

    # Channel-major / token-lane-dense layout: one wrapper transpose over M*8 bytes.
    x = jnp.transpose(kpts.astype(jnp.float32), (0, 2, 1))        # (B, 2, N)

    min_tiles = 2 if B == 1 else 1            # v7x: keep both TensorCores busy
    ts, nts, n_pad_s = _plan_tiles(N, _STATS_TOKEN_TARGET, _LANE, min_tiles)
    ta, nta, n_pad_a = _plan_tiles(N, _APPLY_TOKEN_TARGET, _LANE, min_tiles)
    n_pad = max(n_pad_s, n_pad_a)
    if n_pad != N:
        x = jnp.pad(x, ((0, 0), (0, 0), (0, n_pad - N)))          # zero-pad token axis
    masked = n_pad_s != N

    w1 = l1["w"].astype(jnp.float32)          # (C1, 2)   VPU layer, native layout
    w2 = l2["w"].astype(jnp.bfloat16)         # (C2, C1)  plain MXU A@B operand
    w3 = l3["w"].astype(jnp.bfloat16)         # (F, C2)   plain MXU A@B operand
    b3 = l3["b"].reshape(F, 1).astype(jnp.float32)

    cp = pltpu.CompilerParams(dimension_semantics=("parallel", "parallel"),
                              vmem_limit_bytes=_VMEM_LIMIT)

    def stat_shape(c):
        return jax.ShapeDtypeStruct((B, nts, c, 1), jnp.float32)

    def stat_spec(c):
        return pl.BlockSpec((None, None, c, 1), lambda b, t: (b, t, 0, 0))

    def const(shape):   # parameter resident in VMEM: constant index_map (no re-DMA)
        return pl.BlockSpec(shape, lambda b, t: (0, 0))

    x_spec_s = pl.BlockSpec((None, 2, ts), lambda b, t: (b, 0, t))

    # Per-tile valid-token counts for the Chan combine (only the last tile can be short).
    cnt_np = np.minimum(ts, N - np.arange(nts) * ts).astype(np.float32)
    counts = jnp.asarray(np.tile(cnt_np, B)).reshape(B * nts, 1)
    total = float(M)

    # ---- Pass 1: layer-1 conv per-tile moments (VPU only) ---------------------------
    s1, m21 = pl.pallas_call(
        _make_stats1_kernel(ts, N, masked),
        grid=(B, nts),
        in_specs=[x_spec_s, const((C1, 2))],
        out_specs=(stat_spec(C1), stat_spec(C1)),
        out_shape=(stat_shape(C1), stat_shape(C1)),
        compiler_params=cp,
        cost_estimate=pl.CostEstimate(flops=7 * M * C1, transcendentals=0,
                                      bytes_accessed=M * 2 * 4 + 2 * B * nts * C1 * 4),
    )(x, w1)
    sc1, sh1 = _fold_bn(s1, m21, counts, total, l1["gamma"], l1["beta"])

    # ---- Pass 2: layer-2 conv per-tile moments (bf16 MXU, f32 acc) -------------------
    s2, m22 = pl.pallas_call(
        _make_stats2_kernel(ts, N, masked),
        grid=(B, nts),
        in_specs=[x_spec_s, const((C1, 2)), const((C1, 1)), const((C1, 1)),
                  const((C2, C1))],
        out_specs=(stat_spec(C2), stat_spec(C2)),
        out_shape=(stat_shape(C2), stat_shape(C2)),
        compiler_params=cp,
        cost_estimate=pl.CostEstimate(
            flops=2 * M * C1 * C2 + 7 * M * (C1 + C2), transcendentals=0,
            bytes_accessed=M * 2 * 4 + C1 * C2 * 2 + 2 * B * nts * C2 * 4),
    )(x, w1, sc1, sh1, w2)
    sc2, sh2 = _fold_bn(s2, m22, counts, total, l2["gamma"], l2["beta"])

    # ---- Pass 3: apply folded BN + final conv, lane-dense (B, F, N) output -----------
    out = pl.pallas_call(
        _apply_kernel,
        grid=(B, nta),
        in_specs=[pl.BlockSpec((None, 2, ta), lambda b, t: (b, 0, t)),
                  const((C1, 2)), const((C1, 1)), const((C1, 1)),
                  const((C2, C1)), const((C2, 1)), const((C2, 1)),
                  const((F, C2)), const((F, 1))],
        out_specs=pl.BlockSpec((None, F, ta), lambda b, t: (b, 0, t)),
        out_shape=jax.ShapeDtypeStruct((B, F, n_pad_a), jnp.float32),
        compiler_params=cp,
        cost_estimate=pl.CostEstimate(
            flops=2 * M * (C1 * C2 + C2 * F) + 7 * M * (C1 + C2),
            transcendentals=0,
            bytes_accessed=M * 2 * 4 + M * F * 4 + (C1 * C2 + C2 * F) * 2),
    )(x, w1, sc1, sh1, w2, sc2, sh2, w3, b3)
    if n_pad_a != N:
        out = out[:, :, :N]           # trim padded token columns (static Python branch)
    return out


# Single jit over the whole forward: the two tiny BN-fold XLA ops between the three
# pallas_calls no longer become separate host dispatches (latency-bound shapes).
keypoint_encoder_forward = jax.jit(_keypoint_encoder_forward)


def _reference_forward(kpts, params):
    """Pure-JAX f32 reference of the exact PyTorch math (conv bias applied,
    training-mode BatchNorm with biased variance)."""
    x = kpts.reshape(-1, kpts.shape[-1]).astype(jnp.float32)
    l1, l2, l3 = params

    def conv(h, layer):
        return h @ layer["w"].T + layer["b"][None, :]

    def bn_relu(h, layer):
        mean = h.mean(0, keepdims=True)
        var = ((h - mean) ** 2).mean(0, keepdims=True)
        hn = (h - mean) / jnp.sqrt(var + BN_EPS)
        return jnp.maximum(hn * layer["gamma"][None, :] + layer["beta"][None, :], 0.0)

    h = bn_relu(conv(x, l1), l1)
    h = bn_relu(conv(h, l2), l2)
    h = conv(h, l3)
    B, N, _ = kpts.shape
    return h.reshape(B, N, -1).transpose(0, 2, 1)


if __name__ == "__main__":
    key = jax.random.PRNGKey(0)
    k_kpts, k_scores, k_params = jax.random.split(key, 3)

    B, N = 2, 16
    layers = [32, 64]
    feature_dim = 32

    kpts = jax.random.normal(k_kpts, (B, N, 2), jnp.float32)      # keypoint (x, y)
    scores = jax.random.uniform(k_scores, (B, N), jnp.float32)    # unused (score=False)
    params = init_keypoint_encoder_params(k_params, feature_dim, layers, in_dim=2)

    out = keypoint_encoder_forward(kpts, scores, params)
    out = jax.block_until_ready(out)

    ref = _reference_forward(kpts, params)
    assert out.shape == (B, feature_dim, N), out.shape
    # Kernel uses bf16 MXU operands (f32 accumulation, f32 BN stats); compare against
    # the pure-f32 reference with a tolerance covering bf16 rounding.
    err = float(jnp.max(jnp.abs(out - ref)))
    assert err < 5e-2, f"mismatch vs reference, max abs err = {err}"
    print("KERNEL_OK")
</pallas_src>

<mosaic_0001>
module attributes {stable_mosaic.version = 11 : i64} {
  func.func @kernel(%arg0: i32, %arg1: i32, %arg2: memref<1x2x16xf32, #tpu.memory_space<vmem>>, %arg3: memref<32x2xf32, #tpu.memory_space<vmem>>, %arg4: memref<1x1x32x1xf32, #tpu.memory_space<vmem>>, %arg5: memref<1x1x32x1xf32, #tpu.memory_space<vmem>>) attributes {dimension_semantics = [#tpu.dimension_semantics<parallel>, #tpu.dimension_semantics<parallel>], iteration_bounds = array<i64: 2, 1>, scalar_prefetch = 0 : i64, scratch_operands = 0 : i64, tpu.core_type = #tpu.core_type<tc>, window_params = [{transform_indices = @transform_0, window_bounds = array<i64: 1, 2, 16>}, {pipeline_mode = #tpu.pipeline_mode<synchronous>, transform_indices = @transform_1, window_bounds = array<i64: 32, 2>}, {transform_indices = @transform_2, window_bounds = array<i64: 1, 1, 32, 1>}, {transform_indices = @transform_3, window_bounds = array<i64: 1, 1, 32, 1>}]} {
    %c0 = arith.constant 0 : index
    %c0_0 = arith.constant 0 : index
    %c0_1 = arith.constant 0 : index
    %0 = vector.load %arg2[%c0, %c0_0, %c0_1] : memref<1x2x16xf32, #tpu.memory_space<vmem>>, vector<1x2x16xf32>
    %1 = vector.shape_cast %0 : vector<1x2x16xf32> to vector<2x16xf32>
    %c0_2 = arith.constant 0 : index
    %c0_3 = arith.constant 0 : index
    %2 = vector.load %arg3[%c0_2, %c0_3] : memref<32x2xf32, #tpu.memory_space<vmem>>, vector<32x2xf32>
    %3 = vector.extract_strided_slice %2 {offsets = [0, 0], sizes = [32, 1], strides = [1, 1]} : vector<32x2xf32> to vector<32x1xf32>
    %4 = vector.extract_strided_slice %1 {offsets = [0, 0], sizes = [1, 16], strides = [1, 1]} : vector<2x16xf32> to vector<1x16xf32>
    %5 = vector.broadcast %3 : vector<32x1xf32> to vector<32x16xf32>
    %6 = vector.broadcast %4 : vector<1x16xf32> to vector<32x16xf32>
    %7 = arith.mulf %5, %6 : vector<32x16xf32>
    %8 = vector.extract_strided_slice %2 {offsets = [0, 1], sizes = [32, 1], strides = [1, 1]} : vector<32x2xf32> to vector<32x1xf32>
    %9 = vector.extract_strided_slice %1 {offsets = [1, 0], sizes = [1, 16], strides = [1, 1]} : vector<2x16xf32> to vector<1x16xf32>
    %10 = vector.broadcast %8 : vector<32x1xf32> to vector<32x16xf32>
    %11 = vector.broadcast %9 : vector<1x16xf32> to vector<32x16xf32>
    %12 = arith.mulf %10, %11 : vector<32x16xf32>
    %13 = arith.addf %7, %12 : vector<32x16xf32>
    %cst = arith.constant dense<0.000000e+00> : vector<32xf32>
    %14 = vector.multi_reduction <add>, %13, %cst [1] : vector<32x16xf32> to vector<32xf32>
    %15 = vector.shape_cast %14 : vector<32xf32> to vector<32x1xf32>
    %cst_4 = arith.constant 6.250000e-02 : f32
    %16 = vector.broadcast %cst_4 : f32 to vector<32x1xf32>
    %17 = arith.mulf %15, %16 : vector<32x1xf32>
    %18 = vector.broadcast %17 : vector<32x1xf32> to vector<32x16xf32>
    %19 = arith.subf %13, %18 : vector<32x16xf32>
    %20 = arith.mulf %19, %19 : vector<32x16xf32>
    %cst_5 = arith.constant dense<0.000000e+00> : vector<32xf32>
    %21 = vector.multi_reduction <add>, %20, %cst_5 [1] : vector<32x16xf32> to vector<32xf32>
    %22 = vector.shape_cast %21 : vector<32xf32> to vector<32x1xf32>
    %c0_6 = arith.constant 0 : index
    %c0_7 = arith.constant 0 : index
    %c0_8 = arith.constant 0 : index
    %c0_9 = arith.constant 0 : index
    %23 = vector.load %arg4[%c0_6, %c0_7, %c0_8, %c0_9] : memref<1x1x32x1xf32, #tpu.memory_space<vmem>>, vector<1x1x32x1xf32>
    %24 = vector.shape_cast %23 : vector<1x1x32x1xf32> to vector<32x1xf32>
    %25 = vector.shape_cast %15 : vector<32x1xf32> to vector<1x1x32x1xf32>
    tpu.vector_store %arg4[%c0_6, %c0_7, %c0_8, %c0_9], %25 {strides = array<i32>} : memref<1x1x32x1xf32, #tpu.memory_space<vmem>>, vector<1x1x32x1xf32>,
    %c0_10 = arith.constant 0 : index
    %c0_11 = arith.constant 0 : index
    %c0_12 = arith.constant 0 : index
    %c0_13 = arith.constant 0 : index
    %26 = vector.load %arg5[%c0_10, %c0_11, %c0_12, %c0_13] : memref<1x1x32x1xf32, #tpu.memory_space<vmem>>, vector<1x1x32x1xf32>
    %27 = vector.shape_cast %26 : vector<1x1x32x1xf32> to vector<32x1xf32>
    %28 = vector.shape_cast %22 : vector<32x1xf32> to vector<1x1x32x1xf32>
    tpu.vector_store %arg5[%c0_10, %c0_11, %c0_12, %c0_13], %28 {strides = array<i32>} : memref<1x1x32x1xf32, #tpu.memory_space<vmem>>, vector<1x1x32x1xf32>,
    return
  }
  func.func @transform_0(%arg0: i32, %arg1: i32) -> (i32, i32, i32) {
    %c0_i32 = arith.constant 0 : i32
    %c0_i32_0 = arith.constant 0 : i32
    return %arg0, %c0_i32, %arg1 : i32, i32, i32
  }
  func.func @transform_1(%arg0: i32, %arg1: i32) -> (i32, i32) {
    %c0_i32 = arith.constant 0 : i32
    %c0_i32_0 = arith.constant 0 : i32
    %c0_i32_1 = arith.constant 0 : i32
    return %c0_i32, %c0_i32_0 : i32, i32
  }
  func.func @transform_2(%arg0: i32, %arg1: i32) -> (i32, i32, i32, i32) {
    %c0_i32 = arith.constant 0 : i32
    %c0_i32_0 = arith.constant 0 : i32
    %c0_i32_1 = arith.constant 0 : i32
    return %arg0, %arg1, %c0_i32, %c0_i32_0 : i32, i32, i32, i32
  }
  func.func @transform_3(%arg0: i32, %arg1: i32) -> (i32, i32, i32, i32) {
    %c0_i32 = arith.constant 0 : i32
    %c0_i32_0 = arith.constant 0 : i32
    %c0_i32_1 = arith.constant 0 : i32
    return %arg0, %arg1, %c0_i32, %c0_i32_0 : i32, i32, i32, i32
  }
}

module attributes {stable_mosaic.version = 11 : i64} {
  func.func @kernel(%arg0: i32, %arg1: i32, %arg2: memref<1x2x16xf32, #tpu.memory_space<vmem>>, %arg3: memref<32x2xf32, #tpu.memory_space<vmem>>, %arg4: memref<32x1xf32, #tpu.memory_space<vmem>>, %arg5: memref<32x1xf32, #tpu.memory_space<vmem>>, %arg6: memref<64x32xbf16, #tpu.memory_space<vmem>>, %arg7: memref<1x1x64x1xf32, #tpu.memory_space<vmem>>, %arg8: memref<1x1x64x1xf32, #tpu.memory_space<vmem>>) attributes {dimension_semantics = [#tpu.dimension_semantics<parallel>, #tpu.dimension_semantics<parallel>], iteration_bounds = array<i64: 2, 1>, scalar_prefetch = 0 : i64, scratch_operands = 0 : i64, tpu.core_type = #tpu.core_type<tc>, window_params = [{transform_indices = @transform_0, window_bounds = array<i64: 1, 2, 16>}, {pipeline_mode = #tpu.pipeline_mode<synchronous>, transform_indices = @transform_1, window_bounds = array<i64: 32, 2>}, {pipeline_mode = #tpu.pipeline_mode<synchronous>, transform_indices = @transform_2, window_bounds = array<i64: 32, 1>}, {pipeline_mode = #tpu.pipeline_mode<synchronous>, transform_indices = @transform_3, window_bounds = array<i64: 32, 1>}, {pipeline_mode = #tpu.pipeline_mode<synchronous>, transform_indices = @transform_4, window_bounds = array<i64: 64, 32>}, {transform_indices = @transform_5, window_bounds = array<i64: 1, 1, 64, 1>}, {transform_indices = @transform_6, window_bounds = array<i64: 1, 1, 64, 1>}]} {
    %c0 = arith.constant 0 : index
    %c0_0 = arith.constant 0 : index
    %c0_1 = arith.constant 0 : index
    %0 = vector.load %arg2[%c0, %c0_0, %c0_1] : memref<1x2x16xf32, #tpu.memory_space<vmem>>, vector<1x2x16xf32>
    %1 = vector.shape_cast %0 : vector<1x2x16xf32> to vector<2x16xf32>
    %c0_2 = arith.constant 0 : index
    %c0_3 = arith.constant 0 : index
    %2 = vector.load %arg3[%c0_2, %c0_3] : memref<32x2xf32, #tpu.memory_space<vmem>>, vector<32x2xf32>
    %3 = vector.extract_strided_slice %2 {offsets = [0, 0], sizes = [32, 1], strides = [1, 1]} : vector<32x2xf32> to vector<32x1xf32>
    %4 = vector.extract_strided_slice %1 {offsets = [0, 0], sizes = [1, 16], strides = [1, 1]} : vector<2x16xf32> to vector<1x16xf32>
    %5 = vector.broadcast %3 : vector<32x1xf32> to vector<32x16xf32>
    %6 = vector.broadcast %4 : vector<1x16xf32> to vector<32x16xf32>
    %7 = arith.mulf %5, %6 : vector<32x16xf32>
    %8 = vector.extract_strided_slice %2 {offsets = [0, 1], sizes = [32, 1], strides = [1, 1]} : vector<32x2xf32> to vector<32x1xf32>
    %9 = vector.extract_strided_slice %1 {offsets = [1, 0], sizes = [1, 16], strides = [1, 1]} : vector<2x16xf32> to vector<1x16xf32>
    %10 = vector.broadcast %8 : vector<32x1xf32> to vector<32x16xf32>
    %11 = vector.broadcast %9 : vector<1x16xf32> to vector<32x16xf32>
    %12 = arith.mulf %10, %11 : vector<32x16xf32>
    %13 = arith.addf %7, %12 : vector<32x16xf32>
    %c0_4 = arith.constant 0 : index
    %c0_5 = arith.constant 0 : index
    %14 = vector.load %arg4[%c0_4, %c0_5] : memref<32x1xf32, #tpu.memory_space<vmem>>, vector<32x1xf32>
    %15 = vector.broadcast %14 : vector<32x1xf32> to vector<32x16xf32>
    %16 = arith.mulf %13, %15 : vector<32x16xf32>
    %c0_6 = arith.constant 0 : index
    %c0_7 = arith.constant 0 : index
    %17 = vector.load %arg5[%c0_6, %c0_7] : memref<32x1xf32, #tpu.memory_space<vmem>>, vector<32x1xf32>
    %18 = vector.broadcast %17 : vector<32x1xf32> to vector<32x16xf32>
    %19 = arith.addf %16, %18 : vector<32x16xf32>
    %cst = arith.constant 0.000000e+00 : f32
    %20 = vector.broadcast %cst : f32 to vector<32x16xf32>
    %21 = arith.maximumf %19, %20 : vector<32x16xf32>
    %c0_8 = arith.constant 0 : index
    %c0_9 = arith.constant 0 : index
    %22 = vector.load %arg6[%c0_8, %c0_9] : memref<64x32xbf16, #tpu.memory_space<vmem>>, vector<64x32xbf16>
    %23 = arith.truncf %21 : vector<32x16xf32> to vector<32x16xbf16>
    %cst_10 = arith.constant dense<0.000000e+00> : vector<64x16xf32>
    %24 = tpu.matmul %22, %23, %cst_10 {dimension_numbers = #tpu.dot_dimension_numbers<[1], [0], [0], [1], [0, 0, 1, 1], [], []>} : vector<64x32xbf16>, vector<32x16xbf16>, vector<64x16xf32> -> vector<64x16xf32>
    %cst_11 = arith.constant dense<0.000000e+00> : vector<64xf32>
    %25 = vector.multi_reduction <add>, %24, %cst_11 [1] : vector<64x16xf32> to vector<64xf32>
    %26 = vector.shape_cast %25 : vector<64xf32> to vector<64x1xf32>
    %cst_12 = arith.constant 6.250000e-02 : f32
    %27 = vector.broadcast %cst_12 : f32 to vector<64x1xf32>
    %28 = arith.mulf %26, %27 : vector<64x1xf32>
    %29 = vector.broadcast %28 : vector<64x1xf32> to vector<64x16xf32>
    %30 = arith.subf %24, %29 : vector<64x16xf32>
    %31 = arith.mulf %30, %30 : vector<64x16xf32>
    %cst_13 = arith.constant dense<0.000000e+00> : vector<64xf32>
    %32 = vector.multi_reduction <add>, %31, %cst_13 [1] : vector<64x16xf32> to vector<64xf32>
    %33 = vector.shape_cast %32 : vector<64xf32> to vector<64x1xf32>
    %c0_14 = arith.constant 0 : index
    %c0_15 = arith.constant 0 : index
    %c0_16 = arith.constant 0 : index
    %c0_17 = arith.constant 0 : index
    %34 = vector.load %arg7[%c0_14, %c0_15, %c0_16, %c0_17] : memref<1x1x64x1xf32, #tpu.memory_space<vmem>>, vector<1x1x64x1xf32>
    %35 = vector.shape_cast %34 : vector<1x1x64x1xf32> to vector<64x1xf32>
    %36 = vector.shape_cast %26 : vector<64x1xf32> to vector<1x1x64x1xf32>
    tpu.vector_store %arg7[%c0_14, %c0_15, %c0_16, %c0_17], %36 {strides = array<i32>} : memref<1x1x64x1xf32, #tpu.memory_space<vmem>>, vector<1x1x64x1xf32>,
    %c0_18 = arith.constant 0 : index
    %c0_19 = arith.constant 0 : index
    %c0_20 = arith.constant 0 : index
    %c0_21 = arith.constant 0 : index
    %37 = vector.load %arg8[%c0_18, %c0_19, %c0_20, %c0_21] : memref<1x1x64x1xf32, #tpu.memory_space<vmem>>, vector<1x1x64x1xf32>
    %38 = vector.shape_cast %37 : vector<1x1x64x1xf32> to vector<64x1xf32>
    %39 = vector.shape_cast %33 : vector<64x1xf32> to vector<1x1x64x1xf32>
    tpu.vector_store %arg8[%c0_18, %c0_19, %c0_20, %c0_21], %39 {strides = array<i32>} : memref<1x1x64x1xf32, #tpu.memory_space<vmem>>, vector<1x1x64x1xf32>,
    return
  }
  func.func @transform_0(%arg0: i32, %arg1: i32) -> (i32, i32, i32) {
    %c0_i32 = arith.constant 0 : i32
    %c0_i32_0 = arith.constant 0 : i32
    return %arg0, %c0_i32, %arg1 : i32, i32, i32
  }
  func.func @transform_1(%arg0: i32, %arg1: i32) -> (i32, i32) {
    %c0_i32 = arith.constant 0 : i32
    %c0_i32_0 = arith.constant 0 : i32
    %c0_i32_1 = arith.constant 0 : i32
    return %c0_i32, %c0_i32_0 : i32, i32
  }
  func.func @transform_2(%arg0: i32, %arg1: i32) -> (i32, i32) {
    %c0_i32 = arith.constant 0 : i32
    %c0_i32_0 = arith.constant 0 : i32
    %c0_i32_1 = arith.constant 0 : i32
    return %c0_i32, %c0_i32_0 : i32, i32
  }
  func.func @transform_3(%arg0: i32, %arg1: i32) -> (i32, i32) {
    %c0_i32 = arith.constant 0 : i32
    %c0_i32_0 = arith.constant 0 : i32
    %c0_i32_1 = arith.constant 0 : i32
    return %c0_i32, %c0_i32_0 : i32, i32
  }
  func.func @transform_4(%arg0: i32, %arg1: i32) -> (i32, i32) {
    %c0_i32 = arith.constant 0 : i32
    %c0_i32_0 = arith.constant 0 : i32
    %c0_i32_1 = arith.constant 0 : i32
    return %c0_i32, %c0_i32_0 : i32, i32
  }
  func.func @transform_5(%arg0: i32, %arg1: i32) -> (i32, i32, i32, i32) {
    %c0_i32 = arith.constant 0 : i32
    %c0_i32_0 = arith.constant 0 : i32
    %c0_i32_1 = arith.constant 0 : i32
    return %arg0, %arg1, %c0_i32, %c0_i32_0 : i32, i32, i32, i32
  }
  func.func @transform_6(%arg0: i32, %arg1: i32) -> (i32, i32, i32, i32) {
    %c0_i32 = arith.constant 0 : i32
    %c0_i32_0 = arith.constant 0 : i32
    %c0_i32_1 = arith.constant 0 : i32
    return %arg0, %arg1, %c0_i32, %c0_i32_0 : i32, i32, i32, i32
  }
}

module attributes {stable_mosaic.version = 11 : i64} {
  func.func @_apply_kernel(%arg0: i32, %arg1: i32, %arg2: memref<1x2x16xf32, #tpu.memory_space<vmem>>, %arg3: memref<32x2xf32, #tpu.memory_space<vmem>>, %arg4: memref<32x1xf32, #tpu.memory_space<vmem>>, %arg5: memref<32x1xf32, #tpu.memory_space<vmem>>, %arg6: memref<64x32xbf16, #tpu.memory_space<vmem>>, %arg7: memref<64x1xf32, #tpu.memory_space<vmem>>, %arg8: memref<64x1xf32, #tpu.memory_space<vmem>>, %arg9: memref<32x64xbf16, #tpu.memory_space<vmem>>, %arg10: memref<32x1xf32, #tpu.memory_space<vmem>>, %arg11: memref<1x32x16xf32, #tpu.memory_space<vmem>>) attributes {dimension_semantics = [#tpu.dimension_semantics<parallel>, #tpu.dimension_semantics<parallel>], iteration_bounds = array<i64: 2, 1>, scalar_prefetch = 0 : i64, scratch_operands = 0 : i64, tpu.core_type = #tpu.core_type<tc>, window_params = [{transform_indices = @transform_0, window_bounds = array<i64: 1, 2, 16>}, {pipeline_mode = #tpu.pipeline_mode<synchronous>, transform_indices = @transform_1, window_bounds = array<i64: 32, 2>}, {pipeline_mode = #tpu.pipeline_mode<synchronous>, transform_indices = @transform_2, window_bounds = array<i64: 32, 1>}, {pipeline_mode = #tpu.pipeline_mode<synchronous>, transform_indices = @transform_3, window_bounds = array<i64: 32, 1>}, {pipeline_mode = #tpu.pipeline_mode<synchronous>, transform_indices = @transform_4, window_bounds = array<i64: 64, 32>}, {pipeline_mode = #tpu.pipeline_mode<synchronous>, transform_indices = @transform_5, window_bounds = array<i64: 64, 1>}, {pipeline_mode = #tpu.pipeline_mode<synchronous>, transform_indices = @transform_6, window_bounds = array<i64: 64, 1>}, {pipeline_mode = #tpu.pipeline_mode<synchronous>, transform_indices = @transform_7, window_bounds = array<i64: 32, 64>}, {pipeline_mode = #tpu.pipeline_mode<synchronous>, transform_indices = @transform_8, window_bounds = array<i64: 32, 1>}, {transform_indices = @transform_9, window_bounds = array<i64: 1, 32, 16>}]} {
    %c0 = arith.constant 0 : index
    %c0_0 = arith.constant 0 : index
    %c0_1 = arith.constant 0 : index
    %0 = vector.load %arg2[%c0, %c0_0, %c0_1] : memref<1x2x16xf32, #tpu.memory_space<vmem>>, vector<1x2x16xf32>
    %1 = vector.shape_cast %0 : vector<1x2x16xf32> to vector<2x16xf32>
    %c0_2 = arith.constant 0 : index
    %c0_3 = arith.constant 0 : index
    %2 = vector.load %arg3[%c0_2, %c0_3] : memref<32x2xf32, #tpu.memory_space<vmem>>, vector<32x2xf32>
    %3 = vector.extract_strided_slice %2 {offsets = [0, 0], sizes = [32, 1], strides = [1, 1]} : vector<32x2xf32> to vector<32x1xf32>
    %4 = vector.extract_strided_slice %1 {offsets = [0, 0], sizes = [1, 16], strides = [1, 1]} : vector<2x16xf32> to vector<1x16xf32>
    %5 = vector.broadcast %3 : vector<32x1xf32> to vector<32x16xf32>
    %6 = vector.broadcast %4 : vector<1x16xf32> to vector<32x16xf32>
    %7 = arith.mulf %5, %6 : vector<32x16xf32>
    %8 = vector.extract_strided_slice %2 {offsets = [0, 1], sizes = [32, 1], strides = [1, 1]} : vector<32x2xf32> to vector<32x1xf32>
    %9 = vector.extract_strided_slice %1 {offsets = [1, 0], sizes = [1, 16], strides = [1, 1]} : vector<2x16xf32> to vector<1x16xf32>
    %10 = vector.broadcast %8 : vector<32x1xf32> to vector<32x16xf32>
    %11 = vector.broadcast %9 : vector<1x16xf32> to vector<32x16xf32>
    %12 = arith.mulf %10, %11 : vector<32x16xf32>
    %13 = arith.addf %7, %12 : vector<32x16xf32>
    %c0_4 = arith.constant 0 : index
    %c0_5 = arith.constant 0 : index
    %14 = vector.load %arg4[%c0_4, %c0_5] : memref<32x1xf32, #tpu.memory_space<vmem>>, vector<32x1xf32>
    %15 = vector.broadcast %14 : vector<32x1xf32> to vector<32x16xf32>
    %16 = arith.mulf %13, %15 : vector<32x16xf32>
    %c0_6 = arith.constant 0 : index
    %c0_7 = arith.constant 0 : index
    %17 = vector.load %arg5[%c0_6, %c0_7] : memref<32x1xf32, #tpu.memory_space<vmem>>, vector<32x1xf32>
    %18 = vector.broadcast %17 : vector<32x1xf32> to vector<32x16xf32>
    %19 = arith.addf %16, %18 : vector<32x16xf32>
    %cst = arith.constant 0.000000e+00 : f32
    %20 = vector.broadcast %cst : f32 to vector<32x16xf32>
    %21 = arith.maximumf %19, %20 : vector<32x16xf32>
    %c0_8 = arith.constant 0 : index
    %c0_9 = arith.constant 0 : index
    %22 = vector.load %arg6[%c0_8, %c0_9] : memref<64x32xbf16, #tpu.memory_space<vmem>>, vector<64x32xbf16>
    %23 = arith.truncf %21 : vector<32x16xf32> to vector<32x16xbf16>
    %cst_10 = arith.constant dense<0.000000e+00> : vector<64x16xf32>
    %24 = tpu.matmul %22, %23, %cst_10 {dimension_numbers = #tpu.dot_dimension_numbers<[1], [0], [0], [1], [0, 0, 1, 1], [], []>} : vector<64x32xbf16>, vector<32x16xbf16>, vector<64x16xf32> -> vector<64x16xf32>
    %c0_11 = arith.constant 0 : index
    %c0_12 = arith.constant 0 : index
    %25 = vector.load %arg7[%c0_11, %c0_12] : memref<64x1xf32, #tpu.memory_space<vmem>>, vector<64x1xf32>
    %26 = vector.broadcast %25 : vector<64x1xf32> to vector<64x16xf32>
    %27 = arith.mulf %24, %26 : vector<64x16xf32>
    %c0_13 = arith.constant 0 : index
    %c0_14 = arith.constant 0 : index
    %28 = vector.load %arg8[%c0_13, %c0_14] : memref<64x1xf32, #tpu.memory_space<vmem>>, vector<64x1xf32>
    %29 = vector.broadcast %28 : vector<64x1xf32> to vector<64x16xf32>
    %30 = arith.addf %27, %29 : vector<64x16xf32>
    %cst_15 = arith.constant 0.000000e+00 : f32
    %31 = vector.broadcast %cst_15 : f32 to vector<64x16xf32>
    %32 = arith.maximumf %30, %31 : vector<64x16xf32>
    %c0_16 = arith.constant 0 : index
    %c0_17 = arith.constant 0 : index
    %33 = vector.load %arg9[%c0_16, %c0_17] : memref<32x64xbf16, #tpu.memory_space<vmem>>, vector<32x64xbf16>
    %34 = arith.truncf %32 : vector<64x16xf32> to vector<64x16xbf16>
    %cst_18 = arith.constant dense<0.000000e+00> : vector<32x16xf32>
    %35 = tpu.matmul %33, %34, %cst_18 {dimension_numbers = #tpu.dot_dimension_numbers<[1], [0], [0], [1], [0, 0, 1, 1], [], []>} : vector<32x64xbf16>, vector<64x16xbf16>, vector<32x16xf32> -> vector<32x16xf32>
    %c0_19 = arith.constant 0 : index
    %c0_20 = arith.constant 0 : index
    %36 = vector.load %arg10[%c0_19, %c0_20] : memref<32x1xf32, #tpu.memory_space<vmem>>, vector<32x1xf32>
    %37 = vector.broadcast %36 : vector<32x1xf32> to vector<32x16xf32>
    %38 = arith.addf %35, %37 : vector<32x16xf32>
    %c0_21 = arith.constant 0 : index
    %c0_22 = arith.constant 0 : index
    %c0_23 = arith.constant 0 : index
    %39 = vector.load %arg11[%c0_21, %c0_22, %c0_23] : memref<1x32x16xf32, #tpu.memory_space<vmem>>, vector<1x32x16xf32>
    %40 = vector.shape_cast %39 : vector<1x32x16xf32> to vector<32x16xf32>
    %41 = vector.shape_cast %38 : vector<32x16xf32> to vector<1x32x16xf32>
    tpu.vector_store %arg11[%c0_21, %c0_22, %c0_23], %41 {strides = array<i32>} : memref<1x32x16xf32, #tpu.memory_space<vmem>>, vector<1x32x16xf32>,
    return
  }
  func.func @transform_0(%arg0: i32, %arg1: i32) -> (i32, i32, i32) {
    %c0_i32 = arith.constant 0 : i32
    %c0_i32_0 = arith.constant 0 : i32
    return %arg0, %c0_i32, %arg1 : i32, i32, i32
  }
  func.func @transform_1(%arg0: i32, %arg1: i32) -> (i32, i32) {
    %c0_i32 = arith.constant 0 : i32
    %c0_i32_0 = arith.constant 0 : i32
    %c0_i32_1 = arith.constant 0 : i32
    return %c0_i32, %c0_i32_0 : i32, i32
  }
  func.func @transform_2(%arg0: i32, %arg1: i32) -> (i32, i32) {
    %c0_i32 = arith.constant 0 : i32
    %c0_i32_0 = arith.constant 0 : i32
    %c0_i32_1 = arith.constant 0 : i32
    return %c0_i32, %c0_i32_0 : i32, i32
  }
  func.func @transform_3(%arg0: i32, %arg1: i32) -> (i32, i32) {
    %c0_i32 = arith.constant 0 : i32
    %c0_i32_0 = arith.constant 0 : i32
    %c0_i32_1 = arith.constant 0 : i32
    return %c0_i32, %c0_i32_0 : i32, i32
  }
  func.func @transform_4(%arg0: i32, %arg1: i32) -> (i32, i32) {
    %c0_i32 = arith.constant 0 : i32
    %c0_i32_0 = arith.constant 0 : i32
    %c0_i32_1 = arith.constant 0 : i32
    return %c0_i32, %c0_i32_0 : i32, i32
  }
  func.func @transform_5(%arg0: i32, %arg1: i32) -> (i32, i32) {
    %c0_i32 = arith.constant 0 : i32
    %c0_i32_0 = arith.constant 0 : i32
    %c0_i32_1 = arith.constant 0 : i32
    return %c0_i32, %c0_i32_0 : i32, i32
  }
  func.func @transform_6(%arg0: i32, %arg1: i32) -> (i32, i32) {
    %c0_i32 = arith.constant 0 : i32
    %c0_i32_0 = arith.constant 0 : i32
    %c0_i32_1 = arith.constant 0 : i32
    return %c0_i32, %c0_i32_0 : i32, i32
  }
  func.func @transform_7(%arg0: i32, %arg1: i32) -> (i32, i32) {
    %c0_i32 = arith.constant 0 : i32
    %c0_i32_0 = arith.constant 0 : i32
    %c0_i32_1 = arith.constant 0 : i32
    return %c0_i32, %c0_i32_0 : i32, i32
  }
  func.func @transform_8(%arg0: i32, %arg1: i32) -> (i32, i32) {
    %c0_i32 = arith.constant 0 : i32
    %c0_i32_0 = arith.constant 0 : i32
    %c0_i32_1 = arith.constant 0 : i32
    return %c0_i32, %c0_i32_0 : i32, i32
  }
  func.func @transform_9(%arg0: i32, %arg1: i32) -> (i32, i32, i32) {
    %c0_i32 = arith.constant 0 : i32
    %c0_i32_0 = arith.constant 0 : i32
    return %arg0, %c0_i32, %arg1 : i32, i32, i32
  }
}

</mosaic_0001>

<bundles_post_ra>
// kernel: _keypoint_encoder_forward.3
= control target key start
LH: loop header
LB: loop body
LE: loop exit
PB: predicated region body
PF: predicated region fallthrough
CT: control target
= control target key end

     0   :  { %s560_s12 = smov 0   ;;  %s562_s13 = smov 0   ;;  %s632_s0 = inlined_call_operand.vmem [shape: f32[2,2,16], index: 0, kind: input, shape index: {}]   ;;  %s633_s1 = inlined_call_operand.vmem [shape: f32[32,2], index: 1, kind: input, shape index: {}]   ;;  %s634_s2 = inlined_call_operand.vmem [shape: f32[2,1,32,1], index: 2, kind: output, shape index: {0}]   ;;  %s635_s3 = inlined_call_operand.vmem [shape: f32[2,1,32,1], index: 3, kind: output, shape index: {1}]  }
   0x1   :  { %s564_s14 = smov 0  }
   0x2 LB: > { %s26_s15 = sadd.s32 1, %s532_s13  ;;  %p474_p0 = scmp.ge.s32.totalorder %s536_s14, 1  ;;  %s536_s14 = sphi %s564_s14, %s14_s14   ;;  %s532_s13 = sphi %s562_s13, %s637_s13   ;;  %s528_s12 = sphi %s560_s12, %s636_s12  }
   0x3   : > { %p28_p1 = scmp.ge.s32.totalorder %s26_s15, 2  ;;  %p160_p2 = scmp.lt.s32.totalorder %s536_s14, 3 }
   0x5   : > { %s639_s15 = smov (%p28_p1, %s26_s15), 0  ;;  %p161_p3 = pnand %p474_p0, %p160_p2 }
   0x6   : > { %p199_p4 = scmp.lt.s32.totalorder (!%p161_p3), %s528_s12, 1 }
   0x7   : > { %164 = sbr.rel (%p161_p3) target bundleno = 440 (0x1b8), region = 28 }
   0xc   : > { %v227_v0 = vld [vmem:[%s633_s1 + $0x10] sm:$0xff]  ;;  %v225_v1 = vld [vmem:[%s633_s1] sm:$0xff]  ;;  %v538_v2 = vmov 0   ;;  %v228_v3 = vld [vmem:[%s633_s1 + $0x18] sm:$0xff]  ;;  %v539_v5 = vmov 1   ;;  %s641_s12 = smov (!%p199_p4, %s528_s12), 1  ;;  %v249_v6 = vlaneseq }
   0xd   : > { %511 = vset.pattern.permute.xlu1 %v538_v2  ;;  %510 = vset.pattern.permute.xlu0 %v538_v2  ;;  %v226_v4 = vld [vmem:[%s633_s1 + $0x8] sm:$0xff]  ;;  %s475_s24 = sshll.u32 %s641_s12, 1  ;;  %vm285_vm0 = vcmask 130048   ;;  %s482_s28 = sshll.u32 %s641_s12, 5  ;;  %vm322_vm1 = vcmask 7168  }
   0xe   : > { %241 = vperm.xlu1 %511, %v227_v0   ;;  %231 = vperm.xlu0 %510, %v225_v1   ;;  %v250_v7 = vshrl.u32 %v249_v6, 7  ;;  %s205_s27 = scalar_lea.vmem %s632_s0, %s475_s24  ;;  %s214_s4 = scalar_lea.vmem %s634_s2, %s482_s28 }
   0xf   : > { %v224_v12 = vld [vmem:[%s205_s27] sm:$0x3]  ;;  %s223_s7 = scalar_lea.vmem %s635_s3, %s482_s28 }
  0x10   : > { %v251_v10 = vsub.s32 0, %v250_v7  ;;  %v275_v11 = vsub.s32 1, %v250_v7 }
  0x12   : > { %246 = vperm.xlu1 %511, %v228_v3   ;;  %236 = vperm.xlu0 %510, %v226_v4   ;;  %v252_v15 = vrot.slane %v224_v12, %v251_v10  ;;  %v276_v16 = vrot.slane %v224_v12, %v275_v11 }
  0x16   : > { %513 = vset.pattern.permute.xlu1 %v539_v5  ;;  %512 = vset.pattern.permute.xlu0 %v539_v5 }
  0x17   : > { %262 = vperm.xlu1 %513, %v226_v4   ;;  %258 = vperm.xlu0 %512, %v225_v1  }
  0x1b   : > { %266 = vperm.xlu1 %513, %v227_v0   ;;  %270 = vperm.xlu0 %512, %v228_v3  }
  0x89   : > { %v242_v8 = vpop.permute.xlu1 %241  ;;  %v232_v9 = vpop.permute.xlu0 %231 }
  0x8a   : > { %v253_v19 = vmul.f32 %v252_v15, %v232_v9  ;;  %v255_v25 = vmul.f32 %v252_v15, %v242_v8 }
  0x8d   : > { %v247_v13 = vpop.permute.xlu1 %246  ;;  %v237_v14 = vpop.permute.xlu0 %236 }
  0x8e   : > { %v254_v20 = vmul.f32 %v252_v15, %v237_v14  ;;  %v256_v26 = vmul.f32 %v252_v15, %v247_v13 }
  0x92   : > { %v263_v17 = vpop.permute.xlu1 %262  ;;  %v259_v18 = vpop.permute.xlu0 %258 }
  0x93   : > { %v278_v21 = vmul.f32 %v276_v16, %v263_v17  ;;  %v277_v22 = vmul.f32 %v276_v16, %v259_v18 }
  0x95   : > { %v282_v23 = vadd.f32 %v278_v21, %v254_v20  ;;  %v281_v24 = vadd.f32 %v277_v22, %v253_v19 }
  0x96   : > { %v267_v27 = vpop.permute.xlu1 %266  ;;  %v271_v28 = vpop.permute.xlu0 %270 }
  0x97   : > { %v279_v29 = vmul.f32 %v276_v16, %v267_v27  ;;  %v280_v30 = vmul.f32 %v276_v16, %v271_v28  ;;  %v289_v31 = vsel %vm285_vm0, %v282_v23, 0.0  ;;  %v286_v32 = vsel %vm285_vm0, %v281_v24, 0.0 }
  0x98   : > { %290 = vadd.xlane.f32.xlu0 %v289_v31  ;;  %287 = vadd.xlane.f32.xlu1 %v286_v32 }
  0x99   : > { %v283_v33 = vadd.f32 %v279_v29, %v255_v25  ;;  %v284_v34 = vadd.f32 %v280_v30, %v256_v26 }
  0x9b   : > { %v292_v35 = vsel %vm285_vm0, %v283_v33, 0.0  ;;  %v295_v36 = vsel %vm285_vm0, %v284_v34, 0.0 }
  0x9c   : > { %293 = vadd.xlane.f32.xlu0 %v292_v35  ;;  %296 = vadd.xlane.f32.xlu1 %v295_v36 }
 0x121   : > { %v291_v37 = vpop.xlane.xlu0 %290  ;;  %v288_v38 = vpop.xlane.xlu1 %287 }
 0x122   : > { %v299_v39 = vmul.f32 0.0625, %v291_v37  ;;  %324 = vst.msk [vmem:[%s214_s4 + $0x8] sm:$0xff] %vm322_vm1, %v291_v37  ;;  %v298_v40 = vmul.f32 0.0625, %v288_v38  ;;  %323 = vst.msk [vmem:[%s214_s4] sm:$0xff] %vm322_vm1, %v288_v38 }
 0x124   : > { %v303_v41 = vsub.f32 %v282_v23, %v299_v39  ;;  %v302_v42 = vsub.f32 %v281_v24, %v298_v40 }
 0x125   : > { %v294_v43 = vpop.xlane.xlu0 %293  ;;  %v297_v44 = vpop.xlane.xlu1 %296 }
 0x126   : > { %v300_v45 = vmul.f32 0.0625, %v294_v43  ;;  %325 = vst.msk [vmem:[%s214_s4 + $0x10] sm:$0xff] %vm322_vm1, %v294_v43  ;;  %v301_v46 = vmul.f32 0.0625, %v297_v44  ;;  %326 = vst.msk [vmem:[%s214_s4 + $0x18] sm:$0xff] %vm322_vm1, %v297_v44  ;;  %v307_v47 = vmul.f32 %v303_v41, %v303_v41  ;;  %v306_v48 = vmul.f32 %v302_v42, %v302_v42 }
 0x128   : > { %v313_v49 = vsel %vm285_vm0, %v307_v47, 0.0  ;;  %v310_v50 = vsel %vm285_vm0, %v306_v48, 0.0  ;;  %v304_v51 = vsub.f32 %v283_v33, %v300_v45  ;;  %v305_v52 = vsub.f32 %v284_v34, %v301_v46 }
 0x129   : > { %314 = vadd.xlane.f32.xlu1 %v313_v49  ;;  %311 = vadd.xlane.f32.xlu0 %v310_v50 }
 0x12a   : > { %v308_v53 = vmul.f32 %v304_v51, %v304_v51  ;;  %v309_v54 = vmul.f32 %v305_v52, %v305_v52 }
 0x12c   : > { %v316_v55 = vsel %vm285_vm0, %v308_v53, 0.0  ;;  %v319_v56 = vsel %vm285_vm0, %v309_v54, 0.0 }
 0x12d   : > { %317 = vadd.xlane.f32.xlu0 %v316_v55  ;;  %320 = vadd.xlane.f32.xlu1 %v319_v56 }
 0x1b2   : > { %v312_v57 = vpop.xlane.xlu0 %311  ;;  %v315_v58 = vpop.xlane.xlu1 %314 }
 0x1b3   : > { %327 = vst.msk [vmem:[%s223_s7] sm:$0xff] %vm322_vm1, %v312_v57  ;;  %328 = vst.msk [vmem:[%s223_s7 + $0x8] sm:$0xff] %vm322_vm1, %v315_v58 }
 0x1b6   : > { %v318_v59 = vpop.xlane.xlu0 %317  ;;  %v321_v60 = vpop.xlane.xlu1 %320 }
 0x1b7   : > { %329 = vst.msk [vmem:[%s223_s7 + $0x10] sm:$0xff] %vm322_vm1, %v318_v59  ;;  %330 = vst.msk [vmem:[%s223_s7 + $0x18] sm:$0xff] %vm322_vm1, %v321_v60 }
 0x1b8 PF: > { %s14_s14 = sadd.s32 1, %s536_s14   ;;  %s636_s12 = smov %s532_s13 }
 0x1b9   : > { %p11_p5 = scmp.ge.s32.totalorder %s14_s14, 4   ;;  %s637_s13 = smov %s639_s15 }
 0x1bb   :  { %13 = sbr.rel (!%p11_p5) target bundleno = 2 (0x2), region = 70 }

// kernel: _keypoint_encoder_forward.4
= control target key start
LH: loop header
LB: loop body
LE: loop exit
PB: predicated region body
PF: predicated region fallthrough
CT: control target
= control target key end

     0   :  { %s905_s21 = smov 0   ;;  %s907_s22 = smov 0   ;;  %s1051_s0 = inlined_call_operand.vmem [shape: f32[2,2,16], index: 0, kind: input, shape index: {}]   ;;  %s1052_s1 = inlined_call_operand.vmem [shape: f32[32,2], index: 1, kind: input, shape index: {}]   ;;  %s1053_s2 = inlined_call_operand.vmem [shape: f32[32,1], index: 2, kind: input, shape index: {}]   ;;  %s1054_s3 = inlined_call_operand.vmem [shape: f32[32,1], index: 3, kind: input, shape index: {}]   ;;  %s1055_s4 = inlined_call_operand.vmem [shape: bf16[64,32], index: 4, kind: input, shape index: {}]   ;;  %s1056_s5 = inlined_call_operand.vmem [shape: f32[2,1,64,1], index: 5, kind: output, shape index: {0}]   ;;  %s1057_s6 = inlined_call_operand.vmem [shape: f32[2,1,64,1], index: 6, kind: output, shape index: {1}]  }
   0x1   :  { %s909_s23 = smov 0  }
   0x2 LB: > { %s29_s24 = sadd.s32 1, %s862_s22  ;;  %p768_p0 = scmp.ge.s32.totalorder %s866_s23, 1  ;;  %s866_s23 = sphi %s909_s23, %s17_s23   ;;  %s862_s22 = sphi %s907_s22, %s1059_s22   ;;  %s858_s21 = sphi %s905_s21, %s1058_s21  }
   0x3   : > { %p31_p1 = scmp.ge.s32.totalorder %s29_s24, 2  ;;  %p235_p2 = scmp.lt.s32.totalorder %s866_s23, 3 }
   0x5   : > { %s1061_s24 = smov (%p31_p1, %s29_s24), 0  ;;  %p236_p3 = pnand %p768_p0, %p235_p2 }
   0x6   : > { %p280_p4 = scmp.lt.s32.totalorder (!%p236_p3), %s858_s21, 1 }
   0x7   : > { %239 = sbr.rel (%p236_p3) target bundleno = 681 (0x2a9), region = 40 }
   0xc   : > { %v309_v0 = vld [vmem:[%s1052_s1 + $0x10] sm:$0xff]  ;;  %v307_v1 = vld [vmem:[%s1052_s1] sm:$0xff]  ;;  %v868_v2 = vmov 1   ;;  %v310_v3 = vld [vmem:[%s1052_s1 + $0x18] sm:$0xff]  ;;  %v869_v4 = vmov 0   ;;  %vm457_vm0 = vcmask 261120   ;;  %v331_v18 = vlaneseq }
   0xd   : > { %836 = vset.pattern.permute.xlu0 %v868_v2  ;;  %834 = vset.pattern.permute.xlu1 %v868_v2  ;;  %v308_v5 = vld [vmem:[%s1052_s1 + $0x8] sm:$0xff]  ;;  %v370_v6 = vld [vmem:[%s1053_s2 + $0x18] sm:$0xff]  ;;  %v369_v7 = vld [vmem:[%s1053_s2 + $0x10] sm:$0xff]  ;;  %s1063_s21 = smov (!%p280_p4, %s858_s21), 1  ;;  %vm535_vm1 = vcmask 130048   ;;  %vm608_vm2 = vcmask 7168  }
   0xe   : > { %348 = vperm.xlu1 %834, %v309_v0   ;;  %340 = vperm.xlu0 %836, %v307_v1   ;;  %v367_v8 = vld [vmem:[%s1053_s2] sm:$0xff]  ;;  %v397_v9 = vld [vmem:[%s1054_s3 + $0x10] sm:$0xff]  ;;  %v398_v11 = vld [vmem:[%s1054_s3 + $0x18] sm:$0xff]  ;;  %s769_s9 = sshll.u32 %s1063_s21, 1  ;;  %v332_v21 = vshrl.u32 %v331_v18, 7  ;;  %s784_s17 = sshll.u32 %s1063_s21, 6 }
   0xf   : > { %v395_v10 = vld [vmem:[%s1054_s3] sm:$0xff]  ;;  %v368_v12 = vld [vmem:[%s1053_s2 + $0x8] sm:$0xff]  ;;  %v841_v15 = vld [vmem:[%s1055_s4 + $0x10] sm:$0xff]   ;;  %s286_s12 = scalar_lea.vmem %s1051_s0, %s769_s9  ;;  %s1002_s20 = scalar_lea.vmem %s1056_s5, %s784_s17 }
  0x10   : > { %v396_v13 = vld [vmem:[%s1054_s3 + $0x8] sm:$0xff]  ;;  %v840_v14 = vld [vmem:[%s1055_s4] sm:$0xff]   ;;  %800 = vmatprep.mubr.msk.bf16.mxu1 %vm457_vm0, %v841_v15  ;;  %v333_v24 = vsub.s32 0, %v332_v21  ;;  %v357_v25 = vsub.s32 1, %v332_v21  ;;  %s304_s27 = scalar_lea.vmem %s1057_s6, %s784_s17 }
  0x11   : > { %796 = vmatprep.mubr.msk.bf16.mxu0 %vm457_vm0, %v840_v14  ;;  %v306_v26 = vld [vmem:[%s286_s12] sm:$0x3] }
  0x12   : > { %352 = vperm.xlu1 %834, %v310_v3   ;;  %837 = vset.pattern.permute.xlu0 %v869_v4  ;;  %v334_v28 = vrot.slane %v306_v26, %v333_v24  ;;  %v358_v30 = vrot.slane %v306_v26, %v357_v25 }
  0x13   : > { %323 = vperm.xlu0 %837, %v309_v0  }
  0x16   : > { %835 = vset.pattern.permute.xlu1 %v869_v4 }
  0x17   : > { %318 = vperm.xlu1 %835, %v308_v5   ;;  %328 = vperm.xlu0 %837, %v310_v3  }
  0x1b   : > { %838 = vset.pattern.permute.xlu1 %v868_v2  ;;  %313 = vperm.xlu0 %837, %v307_v1   ;;  %v842_v1 = vld [vmem:[%s1055_s4 + $0x8] sm:$0xff]   ;;  %v843_v2 = vld [vmem:[%s1055_s4 + $0x18] sm:$0xff]  }
  0x1c   : > { %344 = vperm.xlu1 %838, %v308_v5  }
  0x1f   : > { %388 = vperm.xlu0 %837, %v370_v6  }
  0x20   : > { %839 = vset.pattern.permute.xlu1 %v869_v4 }
  0x21   : > { %383 = vperm.xlu1 %839, %v369_v7  }
  0x23   : > { %373 = vperm.xlu0 %837, %v367_v8  }
  0x25   : > { %411 = vperm.xlu1 %839, %v397_v9  }
  0x27   : > { %401 = vperm.xlu0 %837, %v395_v10  }
  0x29   : > { %416 = vperm.xlu1 %839, %v398_v11  }
  0x2d   : > { %378 = vperm.xlu1 %839, %v368_v12  }
  0x31   : > { %406 = vperm.xlu1 %839, %v396_v13  }
  0x89   : > { %v349_v16 = vpop.permute.xlu1 %348  ;;  %v341_v17 = vpop.permute.xlu0 %340 }
  0x8a   : > { %v361_v34 = vmul.f32 %v358_v30, %v349_v16  ;;  %v359_v46 = vmul.f32 %v358_v30, %v341_v17 }
  0x8d   : > { %v353_v19 = vpop.permute.xlu1 %352 }
  0x8e   : > { %v324_v20 = vpop.permute.xlu0 %323  ;;  %v362_v36 = vmul.f32 %v358_v30, %v353_v19 }
  0x8f   : > { %v337_v31 = vmul.f32 %v334_v28, %v324_v20 }
  0x91   : > { %v365_v37 = vadd.f32 %v361_v34, %v337_v31 }
  0x92   : > { %v319_v22 = vpop.permute.xlu1 %318  ;;  %v329_v23 = vpop.permute.xlu0 %328 }
  0x93   : > { %v338_v35 = vmul.f32 %v334_v28, %v329_v23  ;;  %v336_v49 = vmul.f32 %v334_v28, %v319_v22 }
  0x95   : > { %v366_v39 = vadd.f32 %v362_v36, %v338_v35 }
  0x96   : > { %v314_v27 = vpop.permute.xlu0 %313 }
  0x97   : > { %v345_v29 = vpop.permute.xlu1 %344  ;;  %v335_v42 = vmul.f32 %v334_v28, %v314_v27 }
  0x98   : > { %v360_v47 = vmul.f32 %v358_v30, %v345_v29 }
  0x99   : > { %v363_v50 = vadd.f32 %v359_v46, %v335_v42 }
  0x9a   : > { %v389_v32 = vpop.permute.xlu0 %388  ;;  %v364_v57 = vadd.f32 %v360_v47, %v336_v49 }
  0x9b   : > { %v394_v43 = vmul.f32 %v389_v32, %v366_v39 }
  0x9c   : > { %v384_v33 = vpop.permute.xlu1 %383 }
  0x9d   : > { %v393_v40 = vmul.f32 %v384_v33, %v365_v37 }
  0x9e   : > { %v374_v41 = vpop.permute.xlu0 %373 }
  0x9f   : > { %v391_v55 = vmul.f32 %v374_v41, %v363_v50 }
  0xa0   : > { %v412_v38 = vpop.permute.xlu1 %411 }
  0xa1   : > { %v421_v44 = vadd.f32 %v412_v38, %v393_v40 }
  0xa2   : > { %v402_v53 = vpop.permute.xlu0 %401 }
  0xa3   : > { %v425_v51 = vmax.f32 %v421_v44, 0.0  ;;  %v419_v58 = vadd.f32 %v402_v53, %v391_v55 }
  0xa4   : > { %v417_v45 = vpop.permute.xlu1 %416 }
  0xa5   : > { %v422_v48 = vadd.f32 %v417_v45, %v394_v43  ;;  %v423_v62 = vmax.f32 %v419_v58, 0.0 }
  0xa7   : > { %v426_v52 = vmax.f32 %v422_v48, 0.0 }
  0xa8   : > { %v379_v54 = vpop.permute.xlu1 %378 }
  0xa9   : > { %v436_v56 = vpack.c.bf16 %v426_v52, %v425_v51  ;;  %v392_v59 = vmul.f32 %v379_v54, %v364_v57 }
  0xab   : > { %792 = vmatprep.subr.bf16.mxu0 %v436_v56  ;;  %804 = vmatprep.subr.bf16.mxu1 %v436_v56 }
  0xac   : > { %v407_v60 = vpop.permute.xlu1 %406  ;;  %793 = vmatpush3.bf16.msra.mxu0 %v436_v56  ;;  %806 = vmatpush3.bf16.msra.mxu1 %v436_v56 }
  0xad   : > { %v420_v61 = vadd.f32 %v407_v60, %v392_v59 }
  0xaf   : > { %v424_v63 = vmax.f32 %v420_v61, 0.0 }
  0xb1   : > { %v435_v0 = vpack.c.bf16 %v424_v63, %v423_v62 }
  0xb3   : > { %794 = vmatprep.subr.bf16.mxu0 %v435_v0  ;;  %805 = vmatprep.subr.bf16.mxu1 %v435_v0 }
  0xb4   : > { %795 = vmatpush3.bf16.msra.mxu0 %v435_v0  ;;  %807 = vmatpush3.bf16.msra.mxu1 %v435_v0 }
  0xb7   : > { %797 = vmatmul.mubr.msk.bf16.vlgmr.msra.gmra.mxu0 %vm457_vm0, %v842_v1  ;;  %801 = vmatmul.mubr.msk.bf16.vlgmr.msra.gmra.mxu1 %vm457_vm0, %v843_v2 }
 0x177   : > { %v798_v3 = vpop.f32.mrf.mxu0  ;;  %v802_v4 = vpop.f32.mrf.mxu1 }
 0x178   : > { %v542_v5 = vsel %vm535_vm1, %v798_v3, 0.0  ;;  %v554_v16 = vsel %vm535_vm1, %v802_v4, 0.0 }
 0x179   : > { %v520_v6 = vpop.f32.mrf.mxu1  ;;  %543 = vadd.xlane.f32.xlu0 %v542_v5  ;;  %v504_v7 = vpop.f32.mrf.mxu0 }
 0x17a   : > { %v548_v8 = vsel %vm535_vm1, %v520_v6, 0.0  ;;  %v536_v10 = vsel %vm535_vm1, %v504_v7, 0.0 }
 0x17b   : > { %549 = vadd.xlane.f32.xlu1 %v548_v8  ;;  %v799_v9 = vpop.f32.mrf.mxu0  ;;  %v988_v11 = vpop.f32.mrf.mxu1 }
 0x17c   : > { %v545_v14 = vsel %vm535_vm1, %v799_v9, 0.0  ;;  %v557_v18 = vsel %vm535_vm1, %v988_v11, 0.0 }
 0x17d   : > { %537 = vadd.xlane.f32.xlu0 %v536_v10  ;;  %v507_v12 = vpop.f32.mrf.mxu0  ;;  %v523_v15 = vpop.f32.mrf.mxu1 }
 0x17e   : > { %v539_v13 = vsel %vm535_vm1, %v507_v12, 0.0  ;;  %v551_v17 = vsel %vm535_vm1, %v523_v15, 0.0 }
 0x17f   : > { %540 = vadd.xlane.f32.xlu1 %v539_v13 }
 0x181   : > { %546 = vadd.xlane.f32.xlu0 %v545_v14 }
 0x183   : > { %555 = vadd.xlane.f32.xlu1 %v554_v16 }
 0x185   : > { %552 = vadd.xlane.f32.xlu0 %v551_v17 }
 0x189   : > { %558 = vadd.xlane.f32.xlu0 %v557_v18 }
 0x202   : > { %v544_v19 = vpop.xlane.xlu0 %543 }
 0x203   : > { %v562_v20 = vmul.f32 0.0625, %v544_v19  ;;  %611 = vst.msk [vmem:[%s1002_s20 + $0x10] sm:$0xff] %vm608_vm2, %v544_v19 }
 0x204   : > { %v550_v21 = vpop.xlane.xlu1 %549 }
 0x205   : > { %v564_v22 = vmul.f32 0.0625, %v550_v21  ;;  %613 = vst.msk [vmem:[%s1002_s20 + $0x20] sm:$0xff] %vm608_vm2, %v550_v21  ;;  %v570_v23 = vsub.f32 %v798_v3, %v562_v20 }
 0x206   : > { %v538_v24 = vpop.xlane.xlu0 %537 }
 0x207   : > { %v560_v25 = vmul.f32 0.0625, %v538_v24  ;;  %609 = vst.msk [vmem:[%s1002_s20] sm:$0xff] %vm608_vm2, %v538_v24  ;;  %v578_v26 = vmul.f32 %v570_v23, %v570_v23  ;;  %v572_v28 = vsub.f32 %v520_v6, %v564_v22 }
 0x208   : > { %v541_v27 = vpop.xlane.xlu1 %540 }
 0x209   : > { %v561_v29 = vmul.f32 0.0625, %v541_v27  ;;  %610 = vst.msk [vmem:[%s1002_s20 + $0x8] sm:$0xff] %vm608_vm2, %v541_v27  ;;  %v590_v30 = vsel %vm535_vm1, %v578_v26, 0.0  ;;  %v568_v31 = vsub.f32 %v504_v7, %v560_v25  ;;  %v580_v36 = vmul.f32 %v572_v28, %v572_v28 }
 0x20a   : > { %v547_v32 = vpop.xlane.xlu0 %546  ;;  %591 = vadd.xlane.f32.xlu1 %v590_v30 }
 0x20b   : > { %v563_v33 = vmul.f32 0.0625, %v547_v32  ;;  %612 = vst.msk [vmem:[%s1002_s20 + $0x18] sm:$0xff] %vm608_vm2, %v547_v32  ;;  %v576_v34 = vmul.f32 %v568_v31, %v568_v31  ;;  %v569_v40 = vsub.f32 %v507_v12, %v561_v29  ;;  %v596_v45 = vsel %vm535_vm1, %v580_v36, 0.0 }
 0x20c   : > { %v556_v35 = vpop.xlane.xlu1 %555 }
 0x20d   : > { %v566_v37 = vmul.f32 0.0625, %v556_v35  ;;  %615 = vst.msk [vmem:[%s1002_s20 + $0x30] sm:$0xff] %vm608_vm2, %v556_v35  ;;  %v584_v38 = vsel %vm535_vm1, %v576_v34, 0.0  ;;  %v571_v39 = vsub.f32 %v799_v9, %v563_v33  ;;  %v577_v47 = vmul.f32 %v569_v40, %v569_v40 }
 0x20e   : > { %v553_v41 = vpop.xlane.xlu0 %552  ;;  %585 = vadd.xlane.f32.xlu1 %v584_v38 }
 0x20f   : > { %v565_v42 = vmul.f32 0.0625, %v553_v41  ;;  %614 = vst.msk [vmem:[%s1002_s20 + $0x28] sm:$0xff] %vm608_vm2, %v553_v41  ;;  %v579_v43 = vmul.f32 %v571_v39, %v571_v39  ;;  %v574_v44 = vsub.f32 %v802_v4, %v566_v37  ;;  %v587_v52 = vsel %vm535_vm1, %v577_v47, 0.0 }
 0x211   : > { %v593_v46 = vsel %vm535_vm1, %v579_v43, 0.0  ;;  %v582_v48 = vmul.f32 %v574_v44, %v574_v44  ;;  %v573_v49 = vsub.f32 %v523_v15, %v565_v42 }
 0x212   : > { %594 = vadd.xlane.f32.xlu0 %v593_v46  ;;  %v559_v50 = vpop.xlane.xlu0 %558  ;;  %597 = vadd.xlane.f32.xlu1 %v596_v45 }
 0x213   : > { %v567_v51 = vmul.f32 0.0625, %v559_v50  ;;  %616 = vst.msk [vmem:[%s1002_s20 + $0x38] sm:$0xff] %vm608_vm2, %v559_v50  ;;  %v602_v53 = vsel %vm535_vm1, %v582_v48, 0.0  ;;  %v581_v54 = vmul.f32 %v573_v49, %v573_v49 }
 0x215   : > { %v575_v55 = vsub.f32 %v988_v11, %v567_v51  ;;  %v599_v56 = vsel %vm535_vm1, %v581_v54, 0.0 }
 0x216   : > { %588 = vadd.xlane.f32.xlu0 %v587_v52  ;;  %603 = vadd.xlane.f32.xlu1 %v602_v53 }
 0x217   : > { %v583_v57 = vmul.f32 %v575_v55, %v575_v55 }
 0x219   : > { %v605_v58 = vsel %vm535_vm1, %v583_v57, 0.0 }
 0x21a   : > { %600 = vadd.xlane.f32.xlu0 %v599_v56 }
 0x21e   : > { %606 = vadd.xlane.f32.xlu0 %v605_v58 }
 0x293   : > { %v592_v59 = vpop.xlane.xlu1 %591 }
 0x294   : > { %619 = vst.msk [vmem:[%s304_s27 + $0x10] sm:$0xff] %vm608_vm2, %v592_v59 }
 0x297   : > { %v586_v60 = vpop.xlane.xlu1 %585 }
 0x298   : > { %617 = vst.msk [vmem:[%s304_s27] sm:$0xff] %vm608_vm2, %v586_v60 }
 0x29b   : > { %v595_v61 = vpop.xlane.xlu0 %594  ;;  %v598_v62 = vpop.xlane.xlu1 %597 }
 0x29c   : > { %620 = vst.msk [vmem:[%s304_s27 + $0x18] sm:$0xff] %vm608_vm2, %v595_v61  ;;  %621 = vst.msk [vmem:[%s304_s27 + $0x20] sm:$0xff] %vm608_vm2, %v598_v62 }
 0x29f   : > { %v589_v63 = vpop.xlane.xlu0 %588  ;;  %v604_v0 = vpop.xlane.xlu1 %603 }
 0x2a0   : > { %618 = vst.msk [vmem:[%s304_s27 + $0x8] sm:$0xff] %vm608_vm2, %v589_v63  ;;  %623 = vst.msk [vmem:[%s304_s27 + $0x30] sm:$0xff] %vm608_vm2, %v604_v0 }
 0x2a3   : > { %v601_v1 = vpop.xlane.xlu0 %600 }
 0x2a4   : > { %622 = vst.msk [vmem:[%s304_s27 + $0x28] sm:$0xff] %vm608_vm2, %v601_v1 }
 0x2a7   : > { %v607_v2 = vpop.xlane.xlu0 %606 }
 0x2a8   : > { %624 = vst.msk [vmem:[%s304_s27 + $0x38] sm:$0xff] %vm608_vm2, %v607_v2 }
 0x2a9 PF: > { %s17_s23 = sadd.s32 1, %s866_s23   ;;  %s1058_s21 = smov %s862_s22 }
 0x2aa   : > { %p14_p5 = scmp.ge.s32.totalorder %s17_s23, 4   ;;  %s1059_s22 = smov %s1061_s24 }
 0x2ac   :  { %16 = sbr.rel (!%p14_p5) target bundleno = 2 (0x2), region = 82 }

// kernel: _keypoint_encoder_forward.5
= control target key start
LH: loop header
LB: loop body
LE: loop exit
PB: predicated region body
PF: predicated region fallthrough
CT: control target
= control target key end

     0   :  { %s1067_s30 = smov 0   ;;  %s1069_s10 = smov 0   ;;  %s1228_s0 = inlined_call_operand.vmem [shape: f32[2,2,16], index: 0, kind: input, shape index: {}]   ;;  %s1229_s1 = inlined_call_operand.vmem [shape: f32[32,2], index: 1, kind: input, shape index: {}]   ;;  %s1230_s2 = inlined_call_operand.vmem [shape: f32[32,1], index: 2, kind: input, shape index: {}]   ;;  %s1231_s3 = inlined_call_operand.vmem [shape: f32[32,1], index: 3, kind: input, shape index: {}]   ;;  %s1232_s4 = inlined_call_operand.vmem [shape: bf16[64,32], index: 4, kind: input, shape index: {}]   ;;  %s1233_s5 = inlined_call_operand.vmem [shape: f32[64,1], index: 5, kind: input, shape index: {}]   ;;  %s1234_s6 = inlined_call_operand.vmem [shape: f32[64,1], index: 6, kind: input, shape index: {}]   ;;  %s1235_s7 = inlined_call_operand.vmem [shape: bf16[32,64], index: 7, kind: input, shape index: {}]   ;;  %s1236_s8 = inlined_call_operand.vmem [shape: f32[32,1], index: 8, kind: input, shape index: {}]   ;;  %s1237_s9 = inlined_call_operand.vmem [shape: f32[2,32,16], index: 9, kind: output, shape index: {}]  }
   0x1   :  { %s1071_s11 = smov 0  }
   0x2 LB: > { %s31_s12 = sadd.s32 1, %s1009_s10  ;;  %p898_p0 = scmp.ge.s32.totalorder %s1013_s11, 1  ;;  %s1013_s11 = sphi %s1071_s11, %s19_s11   ;;  %s1009_s10 = sphi %s1069_s10, %s1239_s10   ;;  %s1005_s30 = sphi %s1067_s30, %s1238_s30  }
   0x3   : > { %p33_p1 = scmp.ge.s32.totalorder %s31_s12, 2  ;;  %p305_p2 = scmp.lt.s32.totalorder %s1013_s11, 3 }
   0x5   : > { %s1241_s12 = smov (%p33_p1, %s31_s12), 0  ;;  %p306_p3 = pnand %p898_p0, %p305_p2 }
   0x6   : > { %p346_p4 = scmp.lt.s32.totalorder (!%p306_p3), %s1005_s30, 1 }
   0x7   : > { %309 = sbr.rel (%p306_p3) target bundleno = 614 (0x266), region = 56 }
   0xc   : > { %v365_v0 = vld [vmem:[%s1229_s1 + $0x10] sm:$0xff]  ;;  %v363_v1 = vld [vmem:[%s1229_s1] sm:$0xff]  ;;  %v1015_v2 = vmov 1   ;;  %v366_v3 = vld [vmem:[%s1229_s1 + $0x18] sm:$0xff]  ;;  %v1016_v4 = vmov 0   ;;  %vm513_vm0 = vcmask 261120   ;;  %v387_v37 = vlaneseq }
   0xd   : > { %981 = vset.pattern.permute.xlu0 %v1015_v2  ;;  %979 = vset.pattern.permute.xlu1 %v1015_v2  ;;  %v364_v5 = vld [vmem:[%s1229_s1 + $0x8] sm:$0xff]  ;;  %v426_v6 = vld [vmem:[%s1230_s2 + $0x18] sm:$0xff]  ;;  %v425_v7 = vld [vmem:[%s1230_s2 + $0x10] sm:$0xff]  ;;  %s1243_s30 = smov (!%p346_p4, %s1005_s30), 1  ;;  %vm753_vm1 = vcmask 523264   ;;  %vm809_vm2 = vcmask 130048  }
   0xe   : > { %404 = vperm.xlu1 %979, %v365_v0   ;;  %396 = vperm.xlu0 %981, %v363_v1   ;;  %v423_v8 = vld [vmem:[%s1230_s2] sm:$0xff]  ;;  %v453_v9 = vld [vmem:[%s1231_s3 + $0x10] sm:$0xff]  ;;  %v454_v11 = vld [vmem:[%s1231_s3 + $0x18] sm:$0xff]  ;;  %s899_s28 = sshll.u32 %s1243_s30, 1  ;;  %v388_v40 = vshrl.u32 %v387_v37, 7  ;;  %s916_s25 = sshll.u32 %s1243_s30, 5 }
   0xf   : > { %v451_v10 = vld [vmem:[%s1231_s3] sm:$0xff]  ;;  %v597_v12 = vld [vmem:[%s1233_s5 + $0x30] sm:$0xff]  ;;  %v424_v13 = vld [vmem:[%s1230_s2 + $0x8] sm:$0xff]  ;;  %s352_s14 = scalar_lea.vmem %s1228_s0, %s899_s28  ;;  %s360_s28 = scalar_lea.vmem %s1237_s9, %s916_s25 }
  0x10   : > { %v653_v14 = vld [vmem:[%s1234_s6 + $0x30] sm:$0xff]  ;;  %v452_v15 = vld [vmem:[%s1231_s3 + $0x8] sm:$0xff]  ;;  %v595_v16 = vld [vmem:[%s1233_s5 + $0x20] sm:$0xff]  ;;  %v389_v43 = vsub.s32 0, %v388_v40  ;;  %v413_v44 = vsub.s32 1, %v388_v40 }
  0x11   : > { %v598_v17 = vld [vmem:[%s1233_s5 + $0x38] sm:$0xff]  ;;  %v651_v18 = vld [vmem:[%s1234_s6 + $0x20] sm:$0xff]  ;;  %v593_v21 = vld [vmem:[%s1233_s5 + $0x10] sm:$0xff] }
  0x12   : > { %408 = vperm.xlu1 %979, %v366_v3   ;;  %982 = vset.pattern.permute.xlu0 %v1016_v4  ;;  %v985_v19 = vld [vmem:[%s1232_s4] sm:$0xff]   ;;  %v654_v20 = vld [vmem:[%s1234_s6 + $0x38] sm:$0xff]  ;;  %v596_v22 = vld [vmem:[%s1233_s5 + $0x28] sm:$0xff] }
  0x13   : > { %379 = vperm.xlu0 %982, %v365_v0   ;;  %933 = vmatprep.mubr.msk.bf16.mxu0 %vm513_vm0, %v985_v19  ;;  %v649_v23 = vld [vmem:[%s1234_s6 + $0x10] sm:$0xff]  ;;  %v652_v24 = vld [vmem:[%s1234_s6 + $0x28] sm:$0xff]  ;;  %v591_v25 = vld [vmem:[%s1233_s5] sm:$0xff] }
  0x14   : > { %v594_v26 = vld [vmem:[%s1233_s5 + $0x18] sm:$0xff]  ;;  %v647_v27 = vld [vmem:[%s1234_s6] sm:$0xff]  ;;  %v592_v30 = vld [vmem:[%s1233_s5 + $0x8] sm:$0xff] }
  0x15   : > { %v650_v28 = vld [vmem:[%s1234_s6 + $0x18] sm:$0xff]  ;;  %v719_v29 = vld [vmem:[%s1236_s8] sm:$0xff]  ;;  %v721_v31 = vld [vmem:[%s1236_s8 + $0x10] sm:$0xff] }
  0x16   : > { %980 = vset.pattern.permute.xlu1 %v1016_v4  ;;  %v648_v32 = vld [vmem:[%s1234_s6 + $0x8] sm:$0xff]  ;;  %v722_v34 = vld [vmem:[%s1236_s8 + $0x18] sm:$0xff]  ;;  %v362_v45 = vld [vmem:[%s352_s14] sm:$0x3] }
  0x17   : > { %374 = vperm.xlu1 %980, %v364_v5   ;;  %384 = vperm.xlu0 %982, %v366_v3   ;;  %v720_v33 = vld [vmem:[%s1236_s8 + $0x8] sm:$0xff]  ;;  %v390_v47 = vrot.slane %v362_v45, %v389_v43  ;;  %v414_v49 = vrot.slane %v362_v45, %v413_v44 }
  0x1b   : > { %983 = vset.pattern.permute.xlu1 %v1015_v2  ;;  %369 = vperm.xlu0 %982, %v363_v1  }
  0x1c   : > { %400 = vperm.xlu1 %983, %v364_v5  }
  0x1f   : > { %444 = vperm.xlu0 %982, %v426_v6  }
  0x20   : > { %984 = vset.pattern.permute.xlu1 %v1016_v4 }
  0x21   : > { %439 = vperm.xlu1 %984, %v425_v7  }
  0x23   : > { %429 = vperm.xlu0 %982, %v423_v8  }
  0x25   : > { %467 = vperm.xlu1 %984, %v453_v9  }
  0x27   : > { %457 = vperm.xlu0 %982, %v451_v10  }
  0x29   : > { %472 = vperm.xlu1 %984, %v454_v11  }
  0x2b   : > { %631 = vperm.xlu0 %982, %v597_v12  }
  0x2d   : > { %434 = vperm.xlu1 %984, %v424_v13  }
  0x2f   : > { %687 = vperm.xlu0 %982, %v653_v14  }
  0x31   : > { %462 = vperm.xlu1 %984, %v452_v15  }
  0x33   : > { %621 = vperm.xlu0 %982, %v595_v16  }
  0x35   : > { %636 = vperm.xlu1 %984, %v598_v17  }
  0x37   : > { %677 = vperm.xlu0 %982, %v651_v18  }
  0x39   : > { %692 = vperm.xlu1 %984, %v654_v20   ;;  %v986_v20 = vld [vmem:[%s1232_s4 + $0x8] sm:$0xff]  }
  0x3b   : > { %611 = vperm.xlu0 %982, %v593_v21   ;;  %v987_v21 = vld [vmem:[%s1232_s4 + $0x10] sm:$0xff]  }
  0x3d   : > { %626 = vperm.xlu1 %984, %v596_v22   ;;  %v988_v22 = vld [vmem:[%s1232_s4 + $0x18] sm:$0xff]  }
  0x3f   : > { %667 = vperm.xlu0 %982, %v649_v23   ;;  %v989_v23 = vld [vmem:[%s1235_s7] sm:$0xff]  }
  0x40   : > { %949 = vmatprep.mubr.msk.bf16.mxu1 %vm753_vm1, %v989_v23 }
  0x41   : > { %682 = vperm.xlu1 %984, %v652_v24  }
  0x43   : > { %601 = vperm.xlu0 %982, %v591_v25  }
  0x45   : > { %616 = vperm.xlu1 %984, %v594_v26  }
  0x47   : > { %657 = vperm.xlu0 %982, %v647_v27  }
  0x49   : > { %672 = vperm.xlu1 %984, %v650_v28  }
  0x4b   : > { %725 = vperm.xlu0 %982, %v719_v29  }
  0x4d   : > { %606 = vperm.xlu1 %984, %v592_v30  }
  0x4f   : > { %735 = vperm.xlu0 %982, %v721_v31  }
  0x51   : > { %662 = vperm.xlu1 %984, %v648_v32  }
  0x55   : > { %730 = vperm.xlu1 %984, %v720_v33  }
  0x59   : > { %740 = vperm.xlu1 %984, %v722_v34  }
  0x89   : > { %v405_v35 = vpop.permute.xlu1 %404  ;;  %v397_v36 = vpop.permute.xlu0 %396 }
  0x8a   : > { %v417_v53 = vmul.f32 %v414_v49, %v405_v35  ;;  %v415_v1 = vmul.f32 %v414_v49, %v397_v36 }
  0x8d   : > { %v409_v38 = vpop.permute.xlu1 %408 }
  0x8e   : > { %v380_v39 = vpop.permute.xlu0 %379  ;;  %v418_v55 = vmul.f32 %v414_v49, %v409_v38 }
  0x8f   : > { %v393_v50 = vmul.f32 %v390_v47, %v380_v39 }
  0x91   : > { %v421_v56 = vadd.f32 %v417_v53, %v393_v50 }
  0x92   : > { %v375_v41 = vpop.permute.xlu1 %374  ;;  %v385_v42 = vpop.permute.xlu0 %384 }
  0x93   : > { %v394_v54 = vmul.f32 %v390_v47, %v385_v42  ;;  %v392_v4 = vmul.f32 %v390_v47, %v375_v41 }
  0x95   : > { %v422_v58 = vadd.f32 %v418_v55, %v394_v54 }
  0x96   : > { %v370_v46 = vpop.permute.xlu0 %369 }
  0x97   : > { %v401_v48 = vpop.permute.xlu1 %400  ;;  %v391_v61 = vmul.f32 %v390_v47, %v370_v46 }
  0x98   : > { %v416_v2 = vmul.f32 %v414_v49, %v401_v48 }
  0x99   : > { %v419_v5 = vadd.f32 %v415_v1, %v391_v61 }
  0x9a   : > { %v445_v51 = vpop.permute.xlu0 %444  ;;  %v420_v11 = vadd.f32 %v416_v2, %v392_v4 }
  0x9b   : > { %v450_v62 = vmul.f32 %v445_v51, %v422_v58 }
  0x9c   : > { %v440_v52 = vpop.permute.xlu1 %439 }
  0x9d   : > { %v449_v59 = vmul.f32 %v440_v52, %v421_v56 }
  0x9e   : > { %v430_v60 = vpop.permute.xlu0 %429 }
  0x9f   : > { %v447_v10 = vmul.f32 %v430_v60, %v419_v5 }
  0xa0   : > { %v468_v57 = vpop.permute.xlu1 %467 }
  0xa1   : > { %v477_v63 = vadd.f32 %v468_v57, %v449_v59 }
  0xa2   : > { %v458_v8 = vpop.permute.xlu0 %457 }
  0xa3   : > { %v481_v6 = vmax.f32 %v477_v63, 0.0  ;;  %v475_v13 = vadd.f32 %v458_v8, %v447_v10 }
  0xa4   : > { %v473_v0 = vpop.permute.xlu1 %472 }
  0xa5   : > { %v478_v3 = vadd.f32 %v473_v0, %v450_v62  ;;  %v479_v17 = vmax.f32 %v475_v13, 0.0 }
  0xa6   : > { %v632_v25 = vpop.permute.xlu0 %631 }
  0xa7   : > { %v482_v7 = vmax.f32 %v478_v3, 0.0 }
  0xa8   : > { %v435_v9 = vpop.permute.xlu1 %434 }
  0xa9   : > { %v492_v12 = vpack.c.bf16 %v482_v7, %v481_v6  ;;  %v448_v14 = vmul.f32 %v435_v9, %v420_v11 }
  0xaa   : > { %v688_v27 = vpop.permute.xlu0 %687 }
  0xab   : > { %929 = vmatprep.subr.bf16.mxu0 %v492_v12 }
  0xac   : > { %v463_v15 = vpop.permute.xlu1 %462  ;;  %930 = vmatpush3.bf16.msra.mxu0 %v492_v12  ;;  %v990_v12 = vld [vmem:[%s1235_s7 + $0x8] sm:$0xff]  }
  0xad   : > { %v476_v16 = vadd.f32 %v463_v15, %v448_v14 }
  0xae   : > { %v622_v29 = vpop.permute.xlu0 %621 }
  0xaf   : > { %v480_v18 = vmax.f32 %v476_v16, 0.0 }
  0xb0   : > { %v637_v24 = vpop.permute.xlu1 %636 }
  0xb1   : > { %v491_v19 = vpack.c.bf16 %v480_v18, %v479_v17 }
  0xb2   : > { %v678_v31 = vpop.permute.xlu0 %677 }
  0xb3   : > { %931 = vmatprep.subr.bf16.mxu0 %v491_v19 }
  0xb4   : > { %932 = vmatpush3.bf16.msra.mxu0 %v491_v19  ;;  %v693_v26 = vpop.permute.xlu1 %692 }
  0xb6   : > { %v612_v35 = vpop.permute.xlu0 %611 }
  0xb7   : > { %934 = vmatmul.mubr.msk.bf16.vlgmr.msra.gmra.mxu0 %vm513_vm0, %v986_v20 }
  0xb8   : > { %937 = vmatprep.mubr.msk.bf16.mxu0 %vm513_vm0, %v987_v21  ;;  %v627_v28 = vpop.permute.xlu1 %626 }
  0xba   : > { %v668_v41 = vpop.permute.xlu0 %667 }
  0xbc   : > { %v683_v30 = vpop.permute.xlu1 %682 }
  0xbe   : > { %v602_v54 = vpop.permute.xlu0 %601 }
  0xbf   : > { %938 = vmatmul.mubr.msk.bf16.gmra.mxu0 %vm513_vm0, %v988_v22 }
  0xc0   : > { %v617_v33 = vpop.permute.xlu1 %616 }
  0xc2   : > { %v658_v5 = vpop.permute.xlu0 %657 }
  0xc4   : > { %v673_v38 = vpop.permute.xlu1 %672 }
  0xc6   : > { %v726_v13 = vpop.permute.xlu0 %725 }
  0xc8   : > { %v607_v48 = vpop.permute.xlu1 %606 }
  0xca   : > { %v736_v15 = vpop.permute.xlu0 %735 }
  0xcc   : > { %v663_v1 = vpop.permute.xlu1 %662 }
  0xd0   : > { %v731_v14 = vpop.permute.xlu1 %730 }
  0xd4   : > { %v741_v20 = vpop.permute.xlu1 %740 }
 0x177   : > { %v935_v32 = vpop.f32.mrf.mxu0 }
 0x178   : > { %v641_v49 = vmul.f32 %v935_v32, %v612_v35 }
 0x179   : > { %v560_v34 = vpop.f32.mrf.mxu0 }
 0x17a   : > { %v697_v60 = vadd.f32 %v668_v41, %v641_v49  ;;  %v639_v61 = vmul.f32 %v602_v54, %v560_v34 }
 0x17b   : > { %v936_v36 = vpop.f32.mrf.mxu0 }
 0x17c   : > { %v642_v44 = vmul.f32 %v936_v36, %v617_v33  ;;  %v705_v6 = vmax.f32 %v697_v60, 0.0  ;;  %v695_v7 = vadd.f32 %v658_v5, %v639_v61 }
 0x17d   : > { %v563_v37 = vpop.f32.mrf.mxu0 }
 0x17e   : > { %v698_v55 = vadd.f32 %v673_v38, %v642_v44  ;;  %v640_v56 = vmul.f32 %v607_v48, %v563_v37  ;;  %v703_v10 = vmax.f32 %v695_v7, 0.0 }
 0x17f   : > { %v939_v39 = vpop.f32.mrf.mxu0 }
 0x180   : > { %v645_v40 = vmul.f32 %v939_v39, %v632_v25  ;;  %v706_v2 = vmax.f32 %v698_v55, 0.0  ;;  %v696_v3 = vadd.f32 %v663_v1, %v640_v56 }
 0x181   : > { %v576_v42 = vpop.f32.mrf.mxu0 }
 0x182   : > { %v643_v43 = vmul.f32 %v622_v29, %v576_v42  ;;  %v701_v46 = vadd.f32 %v688_v27, %v645_v40  ;;  %v704_v8 = vmax.f32 %v696_v3, 0.0  ;;  %v716_v9 = vpack.c.bf16 %v706_v2, %v705_v6 }
 0x183   : > { %v940_v45 = vpop.f32.mrf.mxu0 }
 0x184   : > { %v646_v47 = vmul.f32 %v940_v45, %v637_v24  ;;  %v699_v51 = vadd.f32 %v678_v31, %v643_v43  ;;  %v709_v57 = vmax.f32 %v701_v46, 0.0  ;;  %v715_v11 = vpack.c.bf16 %v704_v8, %v703_v10 }
 0x185   : > { %v579_v50 = vpop.f32.mrf.mxu0 }
 0x186   : > { %v702_v52 = vadd.f32 %v693_v26, %v646_v47  ;;  %v644_v53 = vmul.f32 %v627_v28, %v579_v50  ;;  %v707_v62 = vmax.f32 %v699_v51, 0.0 }
 0x188   : > { %v710_v58 = vmax.f32 %v702_v52, 0.0  ;;  %v700_v59 = vadd.f32 %v683_v30, %v644_v53 }
 0x18a   : > { %v708_v63 = vmax.f32 %v700_v59, 0.0  ;;  %v718_v0 = vpack.c.bf16 %v710_v58, %v709_v57 }
 0x18c   : > { %941 = vmatprep.subr.bf16.mxu1 %v718_v0  ;;  %v717_v4 = vpack.c.bf16 %v708_v63, %v707_v62 }
 0x18d   : > { %942 = vmatpush3.bf16.msra.mxu1 %v718_v0 }
 0x18e   : > { %943 = vmatprep.subr.bf16.mxu1 %v717_v4 }
 0x191   : > { %944 = vmatpush3.bf16.msra.mxu1 %v717_v4 }
 0x192   : > { %945 = vmatprep.subr.bf16.mxu1 %v716_v9 }
 0x195   : > { %946 = vmatpush3.bf16.msra.mxu1 %v716_v9 }
 0x196   : > { %947 = vmatprep.subr.bf16.mxu1 %v715_v11 }
 0x199   : > { %948 = vmatpush3.bf16.msra.mxu1 %v715_v11 }
 0x19c   : > { %950 = vmatmul.mubr.msk.bf16.vlgmr.msra.gmra.mxu1 %vm753_vm1, %v990_v12 }
 0x25c   : > { %v951_v16 = vpop.f32.mrf.mxu1 }
 0x25d   : > { %v803_v17 = vadd.f32 %v951_v16, %v736_v15 }
 0x25e   : > { %v794_v18 = vpop.f32.mrf.mxu1 }
 0x25f   : > { %812 = vst.msk [vmem:[%s360_s28 + $0x10] sm:$0xff] %vm809_vm2, %v803_v17  ;;  %v795_v19 = vadd.f32 %v794_v18, %v726_v13 }
 0x260   : > { %v952_v21 = vpop.f32.mrf.mxu1 }
 0x261   : > { %810 = vst.msk [vmem:[%s360_s28] sm:$0xff] %vm809_vm2, %v795_v19  ;;  %v806_v22 = vadd.f32 %v952_v21, %v741_v20 }
 0x262   : > { %v797_v23 = vpop.f32.mrf.mxu1 }
 0x263   : > { %813 = vst.msk [vmem:[%s360_s28 + $0x18] sm:$0xff] %vm809_vm2, %v806_v22  ;;  %v798_v24 = vadd.f32 %v797_v23, %v731_v14 }
 0x265   : > { %811 = vst.msk [vmem:[%s360_s28 + $0x8] sm:$0xff] %vm809_vm2, %v798_v24 }
 0x266 PF: > { %s19_s11 = sadd.s32 1, %s1013_s11   ;;  %s1238_s30 = smov %s1009_s10 }
 0x267   : > { %p16_p5 = scmp.ge.s32.totalorder %s19_s11, 4   ;;  %s1239_s10 = smov %s1241_s12 }
 0x269   :  { %18 = sbr.rel (!%p16_p5) target bundleno = 2 (0x2), region = 86 }

</bundles_post_ra>
